<compile_context>
chip_gen: v7x
topology: tpu7x:2x2x1
jax: 0.10.0
libtpu: 0.0.40
codegen_flags: <defaults>
</compile_context>

<pallas_src>
import jax
import jax.numpy as jnp
from jax.experimental import pallas as pl
from jax.experimental.pallas import tpu as pltpu


# --------------------------------------------------------------------------
# Small helpers
# --------------------------------------------------------------------------
def _round_up(x, m):
    return ((x + m - 1) // m) * m


def _nbytes(shape, dtype):
    n = 1
    for s in shape:
        n *= int(s)
    return n * jnp.dtype(dtype).itemsize


def _supports_single_buffering():
    """Probe whether this JAX exposes BlockSpec(pipeline_mode=pl.Buffered(1))."""
    if not hasattr(pl, "Buffered"):
        return False
    try:
        pl.BlockSpec((8, 128), lambda i: (i, 0), pipeline_mode=pl.Buffered(1))
        return True
    except Exception:
        return False


_SINGLE_BUF = _supports_single_buffering()


def _vmem_budget_bytes():
    """~85% of per-core VMEM; conservative 64 MiB fallback (v7x per-core)."""
    cap = None
    try:
        info = pltpu.get_tpu_info()
        cap = int(getattr(info, "vmem_capacity_bytes", 0)) or None
    except Exception:
        cap = None
    if cap is None:
        cap = 64 * 1024 * 1024
    return int(cap * 0.85)


def _row_align(dtype):
    it = jnp.dtype(dtype).itemsize
    if it >= 4:
        return 8
    if it == 2:
        return 16
    return 32


def _pick_tm(T, tm, align):
    """Row tile: big enough to feed the MXU, chosen to minimise padding waste."""
    if T <= tm:
        return max(align, _round_up(T, align))
    floor = max(128, align)
    cands = []
    t = tm
    while t >= floor:
        cands.append(t)
        t //= 2
    if not cands:
        cands = [max(align, _round_up(tm, align))]
    # minimise padded total row count; among ties keep the largest tile.
    return min(cands, key=lambda c: (_round_up(T, c), -c))


def _ff_tile_candidates(d_ff, max_tf):
    """128-multiple divisors of d_ff up to max_tf; full d_ff as fallback."""
    cands = [t for t in range(128, min(d_ff, max_tf) + 1, 128) if d_ff % t == 0]
    if d_ff <= max_tf or not cands:
        cands.append(d_ff)
    return sorted(set(cands), reverse=True)


def _resident_vmem_bytes(tm_eff, d_model, d_ff, x_dt, w_dt, out_dt):
    wbuf = 1 if _SINGLE_BUF else 2
    return (
        wbuf * (_nbytes((d_model, d_ff), w_dt) + _nbytes((d_ff, d_model), w_dt)
                + _nbytes((1, d_ff), w_dt) + _nbytes((1, d_model), w_dt))
        + 2 * _nbytes((tm_eff, d_model), x_dt)      # x tile, double-buffered
        + 2 * _nbytes((tm_eff, d_model), out_dt)    # out tile, double-buffered
        + _nbytes((tm_eff, d_ff), jnp.float32)      # h intermediate
        + _nbytes((tm_eff, d_model), jnp.float32)   # epilogue temp
    )


def _stream_vmem_bytes(tm_eff, tf, d_model, x_dt, w_dt, out_dt, use_acc):
    total = (
        2 * _nbytes((tm_eff, d_model), x_dt)        # x tile
        + 2 * _nbytes((d_model, tf), w_dt)          # W1 column block
        + 2 * _nbytes((1, tf), w_dt)                # b1 block
        + 2 * _nbytes((tf, d_model), w_dt)          # W2 row block
        + _nbytes((1, d_model), w_dt)               # b2 (grid-invariant)
        + 2 * _nbytes((tm_eff, d_model), out_dt)    # out tile
        + _nbytes((tm_eff, tf), jnp.float32)        # h intermediate
    )
    if use_acc:
        total += _nbytes((tm_eff, d_model), jnp.float32)
    return total


# --------------------------------------------------------------------------
# Kernels
# --------------------------------------------------------------------------
def _expert_resident_kernel(x_ref, w1_ref, b1_ref, w2_ref, b2_ref, o_ref):
    # Weights fully VMEM-resident; 1-D grid over token tiles.
    h = jnp.dot(x_ref[...], w1_ref[...], preferred_element_type=jnp.float32)
    h = jnp.maximum(h + b1_ref[...].astype(jnp.float32), 0.0)
    out = jnp.dot(h.astype(w2_ref.dtype), w2_ref[...],
                  preferred_element_type=jnp.float32)
    o_ref[...] = (out + b2_ref[...].astype(jnp.float32)).astype(o_ref.dtype)


def _expert_stream_kernel_acc(x_ref, w1_ref, b1_ref, w2_ref, b2_ref, o_ref,
                              acc_ref):
    # grid = (token_tiles, d_ff_tiles); axis 1 is the reduction over d_ff.
    k = pl.program_id(1)

    @pl.when(k == 0)
    def _init():
        acc_ref[...] = jnp.zeros_like(acc_ref)

    h = jnp.dot(x_ref[...], w1_ref[...], preferred_element_type=jnp.float32)
    h = jnp.maximum(h + b1_ref[...].astype(jnp.float32), 0.0)
    acc_ref[...] += jnp.dot(h.astype(w2_ref.dtype), w2_ref[...],
                            preferred_element_type=jnp.float32)

    @pl.when(k == pl.num_programs(1) - 1)
    def _finalize():
        o_ref[...] = (acc_ref[...] + b2_ref[...].astype(jnp.float32)
                      ).astype(o_ref.dtype)


def _expert_stream_kernel_direct(x_ref, w1_ref, b1_ref, w2_ref, b2_ref, o_ref):
    # f32 output: accumulate directly in the resident output block (no scratch).
    k = pl.program_id(1)

    @pl.when(k == 0)
    def _init():
        o_ref[...] = jnp.zeros_like(o_ref)

    h = jnp.dot(x_ref[...], w1_ref[...], preferred_element_type=jnp.float32)
    h = jnp.maximum(h + b1_ref[...].astype(jnp.float32), 0.0)
    o_ref[...] += jnp.dot(h.astype(w2_ref.dtype), w2_ref[...],
                          preferred_element_type=jnp.float32)

    @pl.when(k == pl.num_programs(1) - 1)
    def _finalize():
        o_ref[...] = o_ref[...] + b2_ref[...].astype(jnp.float32)


# --------------------------------------------------------------------------
# Wrapper
# --------------------------------------------------------------------------
def expert_forward(x, w1, b1, w2, b2, *, tm=None, max_tf=2048,
                   compute_dtype=None, resident_weights=None):
    """x: (..., d_model) -> (..., d_model), matching PyTorch Expert.forward.

    w1: (d_model, 4*d_model), b1: (4*d_model,)
    w2: (4*d_model, d_model), b2: (d_model,)
    (weights stored transposed relative to torch.nn.Linear)

    tm: token-row tile (None -> generation-aware default).
    compute_dtype: optional (e.g. jnp.bfloat16) cast of x/weights before the
      matmuls; accumulation is f32 and the output keeps x's original dtype.
    resident_weights: None = auto, True/False to force the path.
    """
    orig_shape = x.shape
    out_dtype = x.dtype
    d_model = orig_shape[-1]
    d_ff = w1.shape[1]
    assert w1.shape == (d_model, d_ff) and w2.shape == (d_ff, d_model)

    if compute_dtype is not None:
        x = x.astype(compute_dtype)
        w1 = w1.astype(compute_dtype)
        b1 = b1.astype(compute_dtype)
        w2 = w2.astype(compute_dtype)
        b2 = b2.astype(compute_dtype)

    budget = _vmem_budget_bytes()
    if tm is None:
        # v5e/v6e (128 MiB VMEM) can afford a larger row tile than v7x (64 MiB).
        tm = 1024 if budget >= 96 * 1024 * 1024 else 512

    xt = x.reshape(-1, d_model)
    T = xt.shape[0]
    align = _row_align(xt.dtype)
    tm_eff = _pick_tm(T, tm, align)
    T_pad = _round_up(T, tm_eff)
    if T_pad != T:
        xt = jnp.pad(xt, ((0, T_pad - T), (0, 0)))

    b1_2d = b1.reshape(1, d_ff)
    b2_2d = b2.reshape(1, d_model)

    # ---- path selection -------------------------------------------------
    res_bytes = _resident_vmem_bytes(tm_eff, d_model, d_ff, xt.dtype, w1.dtype,
                                     out_dtype)
    if resident_weights is None:
        use_resident = res_bytes <= budget
    else:
        use_resident = bool(resident_weights) and res_bytes <= budget

    use_acc = jnp.dtype(out_dtype) != jnp.dtype(jnp.float32)

    # Streamed-path d_ff tile: largest candidate whose working set fits; trade
    # tf down (never tm) first, shrink tm only as a last resort.
    tf = d_ff
    tm_stream = tm_eff
    if not use_resident:
        cands = _ff_tile_candidates(d_ff, max_tf)
        while True:
            fit = [c for c in cands
                   if _stream_vmem_bytes(tm_stream, c, d_model, xt.dtype,
                                         w1.dtype, out_dtype, use_acc) <= budget]
            if fit:
                tf = fit[0]
                break
            half = tm_stream // 2
            if half >= align and half % align == 0:
                tm_stream = half
            else:
                tf = cands[-1]   # smallest candidate; rely on vmem_limit headroom
                break

    flops = 4 * T_pad * d_model * d_ff
    io_bytes = (_nbytes((T_pad, d_model), xt.dtype)
                + _nbytes((T_pad, d_model), out_dtype))
    w_bytes = (_nbytes((d_model, d_ff), w1.dtype)
               + _nbytes((d_ff, d_model), w2.dtype)
               + _nbytes((1, d_ff), b1.dtype)
               + _nbytes((1, d_model), b2.dtype))

    def _launch(allow_single):
        def sb(shape, imap, single=False):
            if single and allow_single:
                return pl.BlockSpec(shape, imap, pipeline_mode=pl.Buffered(1))
            return pl.BlockSpec(shape, imap)

        if use_resident:
            grid = (T_pad // tm_eff,)
            cost = pl.CostEstimate(flops=flops, transcendentals=0,
                                   bytes_accessed=io_bytes + w_bytes)
            return pl.pallas_call(
                _expert_resident_kernel,
                out_shape=jax.ShapeDtypeStruct((T_pad, d_model), out_dtype),
                grid_spec=pltpu.PrefetchScalarGridSpec(
                    num_scalar_prefetch=0,
                    grid=grid,
                    in_specs=[
                        sb((tm_eff, d_model), lambda i: (i, 0)),               # x
                        sb((d_model, d_ff), lambda i: (0, 0), single=True),    # W1
                        sb((1, d_ff), lambda i: (0, 0), single=True),          # b1
                        sb((d_ff, d_model), lambda i: (0, 0), single=True),    # W2
                        sb((1, d_model), lambda i: (0, 0), single=True),       # b2
                    ],
                    out_specs=pl.BlockSpec((tm_eff, d_model), lambda i: (i, 0)),
                ),
                compiler_params=pltpu.CompilerParams(
                    dimension_semantics=("parallel",),
                    vmem_limit_bytes=budget,
                ),
                cost_estimate=cost,
            )(xt, w1, b1_2d, w2, b2_2d)

        # Streamed d_ff reduction path.
        grid = (T_pad // tm_stream, pl.cdiv(d_ff, tf))
        cost = pl.CostEstimate(flops=flops, transcendentals=0,
                               bytes_accessed=io_bytes + grid[0] * w_bytes)
        if use_acc:
            kernel = _expert_stream_kernel_acc
            scratch = [pltpu.VMEM((tm_stream, d_model), jnp.float32)]
        else:
            kernel = _expert_stream_kernel_direct
            scratch = []
        return pl.pallas_call(
            kernel,
            out_shape=jax.ShapeDtypeStruct((T_pad, d_model), out_dtype),
            grid_spec=pltpu.PrefetchScalarGridSpec(
                num_scalar_prefetch=0,
                grid=grid,
                in_specs=[
                    sb((tm_stream, d_model), lambda i, k: (i, 0)),             # x
                    sb((d_model, tf), lambda i, k: (0, k)),                    # W1 cols
                    sb((1, tf), lambda i, k: (0, k)),                          # b1
                    sb((tf, d_model), lambda i, k: (k, 0)),                    # W2 rows
                    sb((1, d_model), lambda i, k: (0, 0), single=True),        # b2
                ],
                out_specs=pl.BlockSpec((tm_stream, d_model), lambda i, k: (i, 0)),
                scratch_shapes=scratch,
            ),
            compiler_params=pltpu.CompilerParams(
                dimension_semantics=("parallel", "arbitrary"),
                vmem_limit_bytes=budget,
            ),
            cost_estimate=cost,
        )(xt, w1, b1_2d, w2, b2_2d)

    try:
        out = _launch(_SINGLE_BUF)
    except Exception:
        if not _SINGLE_BUF:
            raise
        out = _launch(False)   # retry without single-buffered blocks

    if T_pad != T:
        out = out[:T]
    return out.reshape(orig_shape)


# --------------------------------------------------------------------------
# Parameter init + reference
# --------------------------------------------------------------------------
def init_expert_params(key, d_model, dtype=jnp.float32):
    """Deterministic init mimicking nn.Linear defaults (uniform +-1/sqrt(fan_in))."""
    d_ff = 4 * d_model
    k1, k2, k3, k4 = jax.random.split(key, 4)
    bound1 = 1.0 / jnp.sqrt(d_model)
    bound2 = 1.0 / jnp.sqrt(d_ff)
    w1 = jax.random.uniform(k1, (d_model, d_ff), dtype, -bound1, bound1)
    b1 = jax.random.uniform(k2, (d_ff,), dtype, -bound1, bound1)
    w2 = jax.random.uniform(k3, (d_ff, d_model), dtype, -bound2, bound2)
    b2 = jax.random.uniform(k4, (d_model,), dtype, -bound2, bound2)
    return w1, b1, w2, b2


def _reference(x, w1, b1, w2, b2):
    return jnp.maximum(x @ w1 + b1, 0.0) @ w2 + b2


if __name__ == "__main__":
    key = jax.random.PRNGKey(0)
    kx, kp, kx2, kp2, kx3, kp3 = jax.random.split(key, 6)

    # Test 1: small module-consistent shapes; auto path (VMEM-resident weights).
    batch, seq, d_model = 2, 8, 32            # d_ff = 128, T = 16
    x = jax.random.normal(kx, (batch, seq, d_model), dtype=jnp.float32)
    w1, b1, w2, b2 = init_expert_params(kp, d_model)
    y = jax.block_until_ready(expert_forward(x, w1, b1, w2, b2))
    ref = _reference(x, w1, b1, w2, b2)
    assert y.shape == x.shape
    assert jnp.allclose(y, ref, atol=1e-5, rtol=1e-5)

    # Test 2: ragged token count + forced streamed d_ff reduction,
    # f32 output -> direct accumulation into the resident output block.
    batch2, seq2, d_model2 = 3, 5, 128        # d_ff = 512, T = 15 (padded)
    x2 = jax.random.normal(kx2, (batch2, seq2, d_model2), dtype=jnp.float32)
    w1b, b1b, w2b, b2b = init_expert_params(kp2, d_model2)
    y2 = jax.block_until_ready(
        expert_forward(x2, w1b, b1b, w2b, b2b, max_tf=128,
                       resident_weights=False))
    ref2 = _reference(x2, w1b, b1b, w2b, b2b)
    assert y2.shape == x2.shape
    assert jnp.allclose(y2, ref2, atol=1e-4, rtol=1e-4)

    # Test 3: bf16 activations/weights, forced streamed path with the f32
    # scratch accumulator (output dtype bf16).
    batch3, seq3, d_model3 = 2, 8, 64         # d_ff = 256, T = 16
    x3 = jax.random.normal(kx3, (batch3, seq3, d_model3),
                           dtype=jnp.float32).astype(jnp.bfloat16)
    w1c, b1c, w2c, b2c = [a.astype(jnp.bfloat16)
                          for a in init_expert_params(kp3, d_model3)]
    y3 = jax.block_until_ready(
        expert_forward(x3, w1c, b1c, w2c, b2c, max_tf=128,
                       resident_weights=False))
    ref3 = _reference(x3.astype(jnp.float32), w1c.astype(jnp.float32),
                      b1c.astype(jnp.float32), w2c.astype(jnp.float32),
                      b2c.astype(jnp.float32))
    assert y3.shape == x3.shape
    assert jnp.allclose(y3.astype(jnp.float32), ref3, atol=0.05, rtol=0.1)

    print("KERNEL_OK")
</pallas_src>

<mosaic_0001>
module attributes {stable_mosaic.version = 11 : i64} {
  func.func @_expert_resident_kernel(%arg0: i32, %arg1: memref<16x32xf32, #tpu.memory_space<vmem>>, %arg2: memref<32x128xf32, #tpu.memory_space<vmem>>, %arg3: memref<1x128xf32, #tpu.memory_space<vmem>>, %arg4: memref<128x32xf32, #tpu.memory_space<vmem>>, %arg5: memref<1x32xf32, #tpu.memory_space<vmem>>, %arg6: memref<16x32xf32, #tpu.memory_space<vmem>>) attributes {dimension_semantics = [#tpu.dimension_semantics<parallel>], iteration_bounds = array<i64: 1>, scalar_prefetch = 0 : i64, scratch_operands = 0 : i64, tpu.core_type = #tpu.core_type<tc>, window_params = [{transform_indices = @transform_0, window_bounds = array<i64: 16, 32>}, {pipeline_mode = #tpu.pipeline_mode<synchronous>, transform_indices = @transform_1, window_bounds = array<i64: 32, 128>}, {pipeline_mode = #tpu.pipeline_mode<synchronous>, transform_indices = @transform_2, window_bounds = array<i64: 1, 128>}, {pipeline_mode = #tpu.pipeline_mode<synchronous>, transform_indices = @transform_3, window_bounds = array<i64: 128, 32>}, {pipeline_mode = #tpu.pipeline_mode<synchronous>, transform_indices = @transform_4, window_bounds = array<i64: 1, 32>}, {transform_indices = @transform_5, window_bounds = array<i64: 16, 32>}]} {
    %c0 = arith.constant 0 : index
    %c0_0 = arith.constant 0 : index
    %0 = vector.load %arg1[%c0, %c0_0] : memref<16x32xf32, #tpu.memory_space<vmem>>, vector<16x32xf32>
    %c0_1 = arith.constant 0 : index
    %c0_2 = arith.constant 0 : index
    %1 = vector.load %arg2[%c0_1, %c0_2] : memref<32x128xf32, #tpu.memory_space<vmem>>, vector<32x128xf32>
    %cst = arith.constant dense<0.000000e+00> : vector<16x128xf32>
    %2 = tpu.matmul %0, %1, %cst {dimension_numbers = #tpu.dot_dimension_numbers<[1], [0], [0], [1], [0, 0, 1, 1], [], []>} : vector<16x32xf32>, vector<32x128xf32>, vector<16x128xf32> -> vector<16x128xf32>
    %c0_3 = arith.constant 0 : index
    %c0_4 = arith.constant 0 : index
    %3 = vector.load %arg3[%c0_3, %c0_4] : memref<1x128xf32, #tpu.memory_space<vmem>>, vector<1x128xf32>
    %4 = vector.broadcast %3 : vector<1x128xf32> to vector<16x128xf32>
    %5 = arith.addf %2, %4 : vector<16x128xf32>
    %cst_5 = arith.constant 0.000000e+00 : f32
    %6 = vector.broadcast %cst_5 : f32 to vector<16x128xf32>
    %7 = arith.maximumf %5, %6 : vector<16x128xf32>
    %c0_6 = arith.constant 0 : index
    %c0_7 = arith.constant 0 : index
    %8 = vector.load %arg4[%c0_6, %c0_7] : memref<128x32xf32, #tpu.memory_space<vmem>>, vector<128x32xf32>
    %cst_8 = arith.constant dense<0.000000e+00> : vector<16x32xf32>
    %9 = tpu.matmul %7, %8, %cst_8 {dimension_numbers = #tpu.dot_dimension_numbers<[1], [0], [0], [1], [0, 0, 1, 1], [], []>} : vector<16x128xf32>, vector<128x32xf32>, vector<16x32xf32> -> vector<16x32xf32>
    %c0_9 = arith.constant 0 : index
    %c0_10 = arith.constant 0 : index
    %10 = vector.load %arg5[%c0_9, %c0_10] : memref<1x32xf32, #tpu.memory_space<vmem>>, vector<1x32xf32>
    %11 = vector.broadcast %10 : vector<1x32xf32> to vector<16x32xf32>
    %12 = arith.addf %9, %11 : vector<16x32xf32>
    %c0_11 = arith.constant 0 : index
    %c0_12 = arith.constant 0 : index
    %13 = vector.load %arg6[%c0_11, %c0_12] : memref<16x32xf32, #tpu.memory_space<vmem>>, vector<16x32xf32>
    tpu.vector_store %arg6[%c0_11, %c0_12], %12 {strides = array<i32>} : memref<16x32xf32, #tpu.memory_space<vmem>>, vector<16x32xf32>,
    return
  }
  func.func @transform_0(%arg0: i32) -> (i32, i32) {
    %c0_i32 = arith.constant 0 : i32
    %c0_i32_0 = arith.constant 0 : i32
    return %arg0, %c0_i32 : i32, i32
  }
  func.func @transform_1(%arg0: i32) -> (i32, i32) {
    %c0_i32 = arith.constant 0 : i32
    %c0_i32_0 = arith.constant 0 : i32
    %c0_i32_1 = arith.constant 0 : i32
    return %c0_i32, %c0_i32_0 : i32, i32
  }
  func.func @transform_2(%arg0: i32) -> (i32, i32) {
    %c0_i32 = arith.constant 0 : i32
    %c0_i32_0 = arith.constant 0 : i32
    %c0_i32_1 = arith.constant 0 : i32
    return %c0_i32, %c0_i32_0 : i32, i32
  }
  func.func @transform_3(%arg0: i32) -> (i32, i32) {
    %c0_i32 = arith.constant 0 : i32
    %c0_i32_0 = arith.constant 0 : i32
    %c0_i32_1 = arith.constant 0 : i32
    return %c0_i32, %c0_i32_0 : i32, i32
  }
  func.func @transform_4(%arg0: i32) -> (i32, i32) {
    %c0_i32 = arith.constant 0 : i32
    %c0_i32_0 = arith.constant 0 : i32
    %c0_i32_1 = arith.constant 0 : i32
    return %c0_i32, %c0_i32_0 : i32, i32
  }
  func.func @transform_5(%arg0: i32) -> (i32, i32) {
    %c0_i32 = arith.constant 0 : i32
    %c0_i32_0 = arith.constant 0 : i32
    return %arg0, %c0_i32 : i32, i32
  }
}

module attributes {stable_mosaic.version = 11 : i64} {
  func.func @_expert_resident_kernel(%arg0: i32, %arg1: memref<16x32xf32, #tpu.memory_space<vmem>>, %arg2: memref<32x128xf32, #tpu.memory_space<vmem>>, %arg3: memref<1x128xf32, #tpu.memory_space<vmem>>, %arg4: memref<128x32xf32, #tpu.memory_space<vmem>>, %arg5: memref<1x32xf32, #tpu.memory_space<vmem>>, %arg6: memref<16x32xf32, #tpu.memory_space<vmem>>) attributes {dimension_semantics = [#tpu.dimension_semantics<parallel>], iteration_bounds = array<i64: 1>, scalar_prefetch = 0 : i64, scratch_operands = 0 : i64, tpu.core_type = #tpu.core_type<tc>, window_params = [{transform_indices = @transform_0, window_bounds = array<i64: 16, 32>}, {pipeline_mode = #tpu.pipeline_mode<synchronous>, transform_indices = @transform_1, window_bounds = array<i64: 32, 128>}, {pipeline_mode = #tpu.pipeline_mode<synchronous>, transform_indices = @transform_2, window_bounds = array<i64: 1, 128>}, {pipeline_mode = #tpu.pipeline_mode<synchronous>, transform_indices = @transform_3, window_bounds = array<i64: 128, 32>}, {pipeline_mode = #tpu.pipeline_mode<synchronous>, transform_indices = @transform_4, window_bounds = array<i64: 1, 32>}, {transform_indices = @transform_5, window_bounds = array<i64: 16, 32>}]} {
    %c0 = arith.constant 0 : index
    %c0_0 = arith.constant 0 : index
    %0 = vector.load %arg1[%c0, %c0_0] : memref<16x32xf32, #tpu.memory_space<vmem>>, vector<16x32xf32>
    %c0_1 = arith.constant 0 : index
    %c0_2 = arith.constant 0 : index
    %1 = vector.load %arg2[%c0_1, %c0_2] : memref<32x128xf32, #tpu.memory_space<vmem>>, vector<32x128xf32>
    %cst = arith.constant dense<0.000000e+00> : vector<16x128xf32>
    %2 = tpu.matmul %0, %1, %cst {dimension_numbers = #tpu.dot_dimension_numbers<[1], [0], [0], [1], [0, 0, 1, 1], [], []>} : vector<16x32xf32>, vector<32x128xf32>, vector<16x128xf32> -> vector<16x128xf32>
    %c0_3 = arith.constant 0 : index
    %c0_4 = arith.constant 0 : index
    %3 = vector.load %arg3[%c0_3, %c0_4] : memref<1x128xf32, #tpu.memory_space<vmem>>, vector<1x128xf32>
    %4 = vector.broadcast %3 : vector<1x128xf32> to vector<16x128xf32>
    %5 = arith.addf %2, %4 : vector<16x128xf32>
    %cst_5 = arith.constant 0.000000e+00 : f32
    %6 = vector.broadcast %cst_5 : f32 to vector<16x128xf32>
    %7 = arith.maximumf %5, %6 : vector<16x128xf32>
    %c0_6 = arith.constant 0 : index
    %c0_7 = arith.constant 0 : index
    %8 = vector.load %arg4[%c0_6, %c0_7] : memref<128x32xf32, #tpu.memory_space<vmem>>, vector<128x32xf32>
    %cst_8 = arith.constant dense<0.000000e+00> : vector<16x32xf32>
    %9 = tpu.matmul %7, %8, %cst_8 {dimension_numbers = #tpu.dot_dimension_numbers<[1], [0], [0], [1], [0, 0, 1, 1], [], []>} : vector<16x128xf32>, vector<128x32xf32>, vector<16x32xf32> -> vector<16x32xf32>
    %c0_9 = arith.constant 0 : index
    %c0_10 = arith.constant 0 : index
    %10 = vector.load %arg5[%c0_9, %c0_10] : memref<1x32xf32, #tpu.memory_space<vmem>>, vector<1x32xf32>
    %11 = vector.broadcast %10 : vector<1x32xf32> to vector<16x32xf32>
    %12 = arith.addf %9, %11 : vector<16x32xf32>
    %c0_11 = arith.constant 0 : index
    %c0_12 = arith.constant 0 : index
    %13 = vector.load %arg6[%c0_11, %c0_12] : memref<16x32xf32, #tpu.memory_space<vmem>>, vector<16x32xf32>
    tpu.vector_store %arg6[%c0_11, %c0_12], %12 {strides = array<i32>} : memref<16x32xf32, #tpu.memory_space<vmem>>, vector<16x32xf32>,
    return
  }
  func.func @transform_0(%arg0: i32) -> (i32, i32) {
    %c0_i32 = arith.constant 0 : i32
    %c0_i32_0 = arith.constant 0 : i32
    return %arg0, %c0_i32 : i32, i32
  }
  func.func @transform_1(%arg0: i32) -> (i32, i32) {
    %c0_i32 = arith.constant 0 : i32
    %c0_i32_0 = arith.constant 0 : i32
    %c0_i32_1 = arith.constant 0 : i32
    return %c0_i32, %c0_i32_0 : i32, i32
  }
  func.func @transform_2(%arg0: i32) -> (i32, i32) {
    %c0_i32 = arith.constant 0 : i32
    %c0_i32_0 = arith.constant 0 : i32
    %c0_i32_1 = arith.constant 0 : i32
    return %c0_i32, %c0_i32_0 : i32, i32
  }
  func.func @transform_3(%arg0: i32) -> (i32, i32) {
    %c0_i32 = arith.constant 0 : i32
    %c0_i32_0 = arith.constant 0 : i32
    %c0_i32_1 = arith.constant 0 : i32
    return %c0_i32, %c0_i32_0 : i32, i32
  }
  func.func @transform_4(%arg0: i32) -> (i32, i32) {
    %c0_i32 = arith.constant 0 : i32
    %c0_i32_0 = arith.constant 0 : i32
    %c0_i32_1 = arith.constant 0 : i32
    return %c0_i32, %c0_i32_0 : i32, i32
  }
  func.func @transform_5(%arg0: i32) -> (i32, i32) {
    %c0_i32 = arith.constant 0 : i32
    %c0_i32_0 = arith.constant 0 : i32
    return %arg0, %c0_i32 : i32, i32
  }
}

</mosaic_0001>

<bundles_post_ra>
// kernel: tpu_custom_call.1
= control target key start
LH: loop header
LB: loop body
LE: loop exit
PB: predicated region body
PF: predicated region fallthrough
CT: control target
= control target key end

     0   :  { %vm34_vm0 = vcmask 261120   ;;  %s496_s0 = inlined_call_operand.vmem [shape: f32[16,32], index: 0, kind: input, shape index: {}]   ;;  %s497_s1 = inlined_call_operand.vmem [shape: f32[32,128], index: 1, kind: input, shape index: {}]   ;;  %s498_s2 = inlined_call_operand.vmem [shape: f32[1,128], index: 2, kind: input, shape index: {}]   ;;  %s499_s3 = inlined_call_operand.vmem [shape: f32[128,32], index: 3, kind: input, shape index: {}]   ;;  %s500_s4 = inlined_call_operand.vmem [shape: f32[1,32], index: 4, kind: input, shape index: {}]   ;;  %s501_s5 = inlined_call_operand.hbm [shape: f32[16,32], index: 5, kind: output, shape index: {}]  }
   0x1   :  { %v23_v0 = vld [vmem:[%s497_s1] sm:$0xff]  ;;  %v24_v1 = vld [vmem:[%s497_s1 + $0x8] sm:$0xff]  ;;  %v25_v2 = vld [vmem:[%s497_s1 + $0x10] sm:$0xff] }
   0x2   :  { %v308_v3 = vpack.c.bf16 %v24_v1, %v23_v0  ;;  %v26_v4 = vld [vmem:[%s497_s1 + $0x18] sm:$0xff]  ;;  %v21_v5 = vld [vmem:[%s496_s0] sm:$0xff]  ;;  %v119_v8 = vld [vmem:[%s499_s3 + $0x8] sm:$0xff] }
   0x3   :  { %v312_v6 = vpack.c.bf16 %v26_v4, %v25_v2  ;;  %270 = vmatprep.mubr.msk.f32.mxu0 %vm34_vm0, %v21_v5  ;;  %v118_v7 = vld [vmem:[%s499_s3] sm:$0xff]  ;;  %v120_v9 = vld [vmem:[%s499_s3 + $0x10] sm:$0xff]  ;;  %v121_v11 = vld [vmem:[%s499_s3 + $0x18] sm:$0xff] }
   0x4   :  { %309 = vmatprep.subr.bf16.mxu0 %v308_v3  ;;  %v316_v10 = vpack.c.bf16 %v119_v8, %v118_v7  ;;  %v320_v12 = vpack.c.bf16 %v121_v11, %v120_v9  ;;  %v122_v13 = vld [vmem:[%s499_s3 + $0x20] sm:$0xff]  ;;  %v123_v14 = vld [vmem:[%s499_s3 + $0x28] sm:$0xff] }
   0x5   :  { %311 = vmatpush3.bf16.msra.mxu0 %v308_v3 }
   0x6   :  { %313 = vmatprep.subr.bf16.mxu0 %v312_v6  ;;  %317 = vmatprep.subr.bf16.mxu1 %v316_v10 }
   0x7   :  { %319 = vmatpush3.bf16.msra.mxu1 %v316_v10 }
   0x8   :  { %10 = vsyncpa [#allocation3], 0  ;;  %321 = vmatprep.subr.bf16.mxu1 %v320_v12  ;;  %v324_v15 = vpack.c.bf16 %v123_v14, %v122_v13  ;;  %v22_v16 = vld [vmem:[%s496_s0 + $0x8] sm:$0xff]  ;;  %v124_v17 = vld [vmem:[%s499_s3 + $0x30] sm:$0xff] }
   0x9   :  { %315 = vmatpush3.bf16.msra.mxu0 %v312_v6  ;;  %v125_v18 = vld [vmem:[%s499_s3 + $0x38] sm:$0xff]  ;;  %v126_v20 = vld [vmem:[%s499_s3 + $0x40] sm:$0xff]  ;;  %v127_v21 = vld [vmem:[%s499_s3 + $0x48] sm:$0xff] }
   0xa   :  { %v328_v19 = vpack.c.bf16 %v125_v18, %v124_v17  ;;  %v332_v22 = vpack.c.bf16 %v127_v21, %v126_v20  ;;  %v128_v23 = vld [vmem:[%s499_s3 + $0x50] sm:$0xff]  ;;  %v129_v24 = vld [vmem:[%s499_s3 + $0x58] sm:$0xff]  ;;  %v130_v26 = vld [vmem:[%s499_s3 + $0x60] sm:$0xff] }
   0xb   :  { %323 = vmatpush3.bf16.msra.mxu1 %v320_v12  ;;  %v336_v25 = vpack.c.bf16 %v129_v24, %v128_v23  ;;  %v131_v27 = vld [vmem:[%s499_s3 + $0x68] sm:$0xff]  ;;  %v132_v29 = vld [vmem:[%s499_s3 + $0x70] sm:$0xff]  ;;  %v133_v30 = vld [vmem:[%s499_s3 + $0x78] sm:$0xff]  ;;  %s375_s3 = smov [#allocation2]  }
   0xc   :  { %271 = vmatmul.mubr.msk.f32.vlgmr.msra.gmra.mrb[0].mxu0 %vm34_vm0, %v22_v16  ;;  %325 = vmatprep.subr.bf16.mxu1 %v324_v15  ;;  %v340_v28 = vpack.c.bf16 %v131_v27, %v130_v26  ;;  %v344_v31 = vpack.c.bf16 %v133_v30, %v132_v29  ;;  %v234_v32 = vld [vmem:[%s498_s2] ss:$0 sm:$0xff]  ;;  %s223_s13 = sshll.u32 %s375_s3, 4  ;;  %s224_s13 = int_to_ptr.vmem [resolvable:$true] %s223_s13 }
   0xd   :  { %v237_v39 = vld [vmem:[%s500_s4] ss:$0 sm:$0xff]  ;;  %s351_s2 = scalar_lea.vmem %s224_s13, 256  ;;  %p356_p1 = scmp.lt.s32.totalorder %s224_s13, %s224_s13 }
   0xe   :  { %p352_p0 = scmp.ne.s32.totalorder %s224_s13, %s351_s2  ;;  %p357_p2 = scmp.lt.s32.totalorder %s351_s2, %s351_s2 }
   0xf   :  { %327 = vmatpush3.bf16.msra.mxu1 %v324_v15 }
  0x10   :  { %329 = vmatprep.subr.bf16.mxu1 %v328_v19  ;;  %p358_p3 = por %p357_p2, %p356_p1 }
  0x12   :  { %p359_p4 = pnand %p358_p3, %p352_p0 }
  0x13   :  { %331 = vmatpush3.bf16.msra.mxu1 %v328_v19 }
  0x14   :  { %333 = vmatprep.subr.bf16.mxu1 %v332_v22 }
  0x17   :  { %335 = vmatpush3.bf16.msra.mxu1 %v332_v22 }
  0x18   :  { %337 = vmatprep.subr.bf16.mxu1 %v336_v25 }
  0x1b   :  { %339 = vmatpush3.bf16.msra.mxu1 %v336_v25 }
  0x1c   :  { %341 = vmatprep.subr.bf16.mxu1 %v340_v28 }
  0x1f   :  { %343 = vmatpush3.bf16.msra.mxu1 %v340_v28 }
  0x20   :  { %345 = vmatprep.subr.bf16.mxu1 %v344_v31 }
  0x23   :  { %347 = vmatpush3.bf16.msra.mxu1 %v344_v31 }
  0xdf   :  { %v272_v33 = vpop.f32.mrb[0].mxu0 }
  0xe0   :  { %v113_v34 = vadd.f32 %v272_v33, %v234_v32  ;;  %v107_v35 = vpop.f32.mrb[1].mxu0 }
  0xe1   :  { %v108_v36 = vadd.f32 %v234_v32, %v107_v35 }
  0xe2   :  { %v117_v38 = vmax.f32 %v113_v34, 0.0 }
  0xe3   :  { %v116_v37 = vmax.f32 %v108_v36, 0.0 }
  0xe5   :  { %305 = vmatprep.mubr.f32.mxu1 %v116_v37 }
  0xe6   :  { %306 = vmatmul.mubr.f32.vlgmr.msra.gmra.mrb[0].mxu1 %v117_v38 }
 0x1b9   :  { %v307_v40 = vpop.f32.mrb[0].mxu1 }
 0x1ba   :  { %v213_v41 = vadd.f32 %v307_v40, %v237_v39  ;;  %v207_v42 = vpop.f32.mrb[1].mxu1 }
 0x1bb   :  { %v208_v43 = vadd.f32 %v237_v39, %v207_v42 }
 0x1bc   :  { %217 = vst.msk [vmem:[#allocation2 + $0x8] sm:$0xff] %vm34_vm0, %v213_v41 }
 0x1bd   :  { %216 = vst.msk [vmem:[#allocation2] sm:$0xff] %vm34_vm0, %v208_v43 }
 0x1be   :  { %362 = shalt.err (!%p359_p4)
}
 0x1bf   :  { %s363_s15 = scalar_lea.hbm %s501_s5, 256 }
 0x1c0   :  { %p364_p5 = scmp.ne.s32.totalorder %s501_s5, %s363_s15  ;;  %p367_p6 = scmp.lt.u32.totalorder %s363_s15, %s501_s5 }
 0x1c2   :  { %p369_p7 = pnand %p367_p6, %p364_p5 }
 0x1c4   :  { %372 = shalt.err (!%p369_p7)
}
 0x1c5   :  { %s376_s20 = smov 128   ;;  %s377_s21 = smov 8  }
 0x1c6   :  { %229 = dma.vmem_to_hbm [thread:$0]  %s224_s13, 256, %s501_s5, [#allocation3], %s376_s20, %s376_s20, %s377_s21  }
 0x1c7   :  { %373 = dma.done.wait [#allocation3], 256  }
 0x1c8   :  { %374 = vsyncadd [#allocation3], 4294967040 }
 0x1c9   :  { %233 = vsyncpa [#allocation3], 1 }

// kernel: tpu_custom_call.1
= control target key start
LH: loop header
LB: loop body
LE: loop exit
PB: predicated region body
PF: predicated region fallthrough
CT: control target
= control target key end

     0   :  { %vm34_vm0 = vcmask 261120   ;;  %s496_s0 = inlined_call_operand.vmem [shape: f32[16,32], index: 0, kind: input, shape index: {}]   ;;  %s497_s1 = inlined_call_operand.vmem [shape: f32[32,128], index: 1, kind: input, shape index: {}]   ;;  %s498_s2 = inlined_call_operand.vmem [shape: f32[1,128], index: 2, kind: input, shape index: {}]   ;;  %s499_s3 = inlined_call_operand.vmem [shape: f32[128,32], index: 3, kind: input, shape index: {}]   ;;  %s500_s4 = inlined_call_operand.vmem [shape: f32[1,32], index: 4, kind: input, shape index: {}]   ;;  %s501_s5 = inlined_call_operand.hbm [shape: f32[16,32], index: 5, kind: output, shape index: {}]  }
   0x1   :  { %v23_v0 = vld [vmem:[%s497_s1] sm:$0xff]  ;;  %v24_v1 = vld [vmem:[%s497_s1 + $0x8] sm:$0xff]  ;;  %v25_v2 = vld [vmem:[%s497_s1 + $0x10] sm:$0xff] }
   0x2   :  { %v308_v3 = vpack.c.bf16 %v24_v1, %v23_v0  ;;  %v26_v4 = vld [vmem:[%s497_s1 + $0x18] sm:$0xff]  ;;  %v21_v5 = vld [vmem:[%s496_s0] sm:$0xff]  ;;  %v119_v8 = vld [vmem:[%s499_s3 + $0x8] sm:$0xff] }
   0x3   :  { %v312_v6 = vpack.c.bf16 %v26_v4, %v25_v2  ;;  %270 = vmatprep.mubr.msk.f32.mxu0 %vm34_vm0, %v21_v5  ;;  %v118_v7 = vld [vmem:[%s499_s3] sm:$0xff]  ;;  %v120_v9 = vld [vmem:[%s499_s3 + $0x10] sm:$0xff]  ;;  %v121_v11 = vld [vmem:[%s499_s3 + $0x18] sm:$0xff] }
   0x4   :  { %309 = vmatprep.subr.bf16.mxu0 %v308_v3  ;;  %v316_v10 = vpack.c.bf16 %v119_v8, %v118_v7  ;;  %v320_v12 = vpack.c.bf16 %v121_v11, %v120_v9  ;;  %v122_v13 = vld [vmem:[%s499_s3 + $0x20] sm:$0xff]  ;;  %v123_v14 = vld [vmem:[%s499_s3 + $0x28] sm:$0xff] }
   0x5   :  { %311 = vmatpush3.bf16.msra.mxu0 %v308_v3 }
   0x6   :  { %313 = vmatprep.subr.bf16.mxu0 %v312_v6  ;;  %317 = vmatprep.subr.bf16.mxu1 %v316_v10 }
   0x7   :  { %319 = vmatpush3.bf16.msra.mxu1 %v316_v10 }
   0x8   :  { %10 = vsyncpa [#allocation3], 0  ;;  %321 = vmatprep.subr.bf16.mxu1 %v320_v12  ;;  %v324_v15 = vpack.c.bf16 %v123_v14, %v122_v13  ;;  %v22_v16 = vld [vmem:[%s496_s0 + $0x8] sm:$0xff]  ;;  %v124_v17 = vld [vmem:[%s499_s3 + $0x30] sm:$0xff] }
   0x9   :  { %315 = vmatpush3.bf16.msra.mxu0 %v312_v6  ;;  %v125_v18 = vld [vmem:[%s499_s3 + $0x38] sm:$0xff]  ;;  %v126_v20 = vld [vmem:[%s499_s3 + $0x40] sm:$0xff]  ;;  %v127_v21 = vld [vmem:[%s499_s3 + $0x48] sm:$0xff] }
   0xa   :  { %v328_v19 = vpack.c.bf16 %v125_v18, %v124_v17  ;;  %v332_v22 = vpack.c.bf16 %v127_v21, %v126_v20  ;;  %v128_v23 = vld [vmem:[%s499_s3 + $0x50] sm:$0xff]  ;;  %v129_v24 = vld [vmem:[%s499_s3 + $0x58] sm:$0xff]  ;;  %v130_v26 = vld [vmem:[%s499_s3 + $0x60] sm:$0xff] }
   0xb   :  { %323 = vmatpush3.bf16.msra.mxu1 %v320_v12  ;;  %v336_v25 = vpack.c.bf16 %v129_v24, %v128_v23  ;;  %v131_v27 = vld [vmem:[%s499_s3 + $0x68] sm:$0xff]  ;;  %v132_v29 = vld [vmem:[%s499_s3 + $0x70] sm:$0xff]  ;;  %v133_v30 = vld [vmem:[%s499_s3 + $0x78] sm:$0xff]  ;;  %s375_s3 = smov [#allocation2]  }
   0xc   :  { %271 = vmatmul.mubr.msk.f32.vlgmr.msra.gmra.mrb[0].mxu0 %vm34_vm0, %v22_v16  ;;  %325 = vmatprep.subr.bf16.mxu1 %v324_v15  ;;  %v340_v28 = vpack.c.bf16 %v131_v27, %v130_v26  ;;  %v344_v31 = vpack.c.bf16 %v133_v30, %v132_v29  ;;  %v234_v32 = vld [vmem:[%s498_s2] ss:$0 sm:$0xff]  ;;  %s223_s13 = sshll.u32 %s375_s3, 4  ;;  %s224_s13 = int_to_ptr.vmem [resolvable:$true] %s223_s13 }
   0xd   :  { %v237_v39 = vld [vmem:[%s500_s4] ss:$0 sm:$0xff]  ;;  %s351_s2 = scalar_lea.vmem %s224_s13, 256  ;;  %p356_p1 = scmp.lt.s32.totalorder %s224_s13, %s224_s13 }
   0xe   :  { %p352_p0 = scmp.ne.s32.totalorder %s224_s13, %s351_s2  ;;  %p357_p2 = scmp.lt.s32.totalorder %s351_s2, %s351_s2 }
   0xf   :  { %327 = vmatpush3.bf16.msra.mxu1 %v324_v15 }
  0x10   :  { %329 = vmatprep.subr.bf16.mxu1 %v328_v19  ;;  %p358_p3 = por %p357_p2, %p356_p1 }
  0x12   :  { %p359_p4 = pnand %p358_p3, %p352_p0 }
  0x13   :  { %331 = vmatpush3.bf16.msra.mxu1 %v328_v19 }
  0x14   :  { %333 = vmatprep.subr.bf16.mxu1 %v332_v22 }
  0x17   :  { %335 = vmatpush3.bf16.msra.mxu1 %v332_v22 }
  0x18   :  { %337 = vmatprep.subr.bf16.mxu1 %v336_v25 }
  0x1b   :  { %339 = vmatpush3.bf16.msra.mxu1 %v336_v25 }
  0x1c   :  { %341 = vmatprep.subr.bf16.mxu1 %v340_v28 }
  0x1f   :  { %343 = vmatpush3.bf16.msra.mxu1 %v340_v28 }
  0x20   :  { %345 = vmatprep.subr.bf16.mxu1 %v344_v31 }
  0x23   :  { %347 = vmatpush3.bf16.msra.mxu1 %v344_v31 }
  0xdf   :  { %v272_v33 = vpop.f32.mrb[0].mxu0 }
  0xe0   :  { %v113_v34 = vadd.f32 %v272_v33, %v234_v32  ;;  %v107_v35 = vpop.f32.mrb[1].mxu0 }
  0xe1   :  { %v108_v36 = vadd.f32 %v234_v32, %v107_v35 }
  0xe2   :  { %v117_v38 = vmax.f32 %v113_v34, 0.0 }
  0xe3   :  { %v116_v37 = vmax.f32 %v108_v36, 0.0 }
  0xe5   :  { %305 = vmatprep.mubr.f32.mxu1 %v116_v37 }
  0xe6   :  { %306 = vmatmul.mubr.f32.vlgmr.msra.gmra.mrb[0].mxu1 %v117_v38 }
 0x1b9   :  { %v307_v40 = vpop.f32.mrb[0].mxu1 }
 0x1ba   :  { %v213_v41 = vadd.f32 %v307_v40, %v237_v39  ;;  %v207_v42 = vpop.f32.mrb[1].mxu1 }
 0x1bb   :  { %v208_v43 = vadd.f32 %v237_v39, %v207_v42 }
 0x1bc   :  { %217 = vst.msk [vmem:[#allocation2 + $0x8] sm:$0xff] %vm34_vm0, %v213_v41 }
 0x1bd   :  { %216 = vst.msk [vmem:[#allocation2] sm:$0xff] %vm34_vm0, %v208_v43 }
 0x1be   :  { %362 = shalt.err (!%p359_p4)
}
 0x1bf   :  { %s363_s15 = scalar_lea.hbm %s501_s5, 256 }
 0x1c0   :  { %p364_p5 = scmp.ne.s32.totalorder %s501_s5, %s363_s15  ;;  %p367_p6 = scmp.lt.u32.totalorder %s363_s15, %s501_s5 }
 0x1c2   :  { %p369_p7 = pnand %p367_p6, %p364_p5 }
 0x1c4   :  { %372 = shalt.err (!%p369_p7)
}
 0x1c5   :  { %s376_s20 = smov 128   ;;  %s377_s21 = smov 8  }
 0x1c6   :  { %229 = dma.vmem_to_hbm [thread:$0]  %s224_s13, 256, %s501_s5, [#allocation3], %s376_s20, %s376_s20, %s377_s21  }
 0x1c7   :  { %373 = dma.done.wait [#allocation3], 256  }
 0x1c8   :  { %374 = vsyncadd [#allocation3], 4294967040 }
 0x1c9   :  { %233 = vsyncpa [#allocation3], 1 }

</bundles_post_ra>
